<compile_context>
chip_gen: v7x
topology: tpu7x:2x2x1
jax: 0.10.0
libtpu: 0.0.40
codegen_flags: <defaults>
</compile_context>

<pallas_src>
import jax
import jax.numpy as jnp
from jax.experimental import pallas as pl
from jax.experimental.pallas import tpu as pltpu

_TARGET_BLOCK_BYTES = 2 * 1024 * 1024  # ~2 MiB/block; x2 (in+out) x2 (double buffer) = 8 MiB


def _copy_kernel(x_ref, o_ref):
    # One (R, cols) tile: full, unmasked vector load/store of a contiguous chunk.
    o_ref[...] = x_ref[...]


def _pick_cols(n: int) -> int | None:
    """Largest 128-multiple column width dividing n, preferring rows >= 8."""
    best = None
    for c in (4096, 2048, 1024, 512, 256, 128):
        if n % c == 0:
            if best is None:
                best = c
            if n // c >= 8:
                return c
    return best


def _pick_row_block(rows: int, cols: int, itemsize: int) -> int:
    # Sublane packing: f32 -> 8 rows/vreg, bf16 -> 16, int8/fp8 -> 32.
    sub = max(8, 32 // itemsize)
    if rows <= sub:
        return rows  # block equals full array extent on this dim -> always legal
    r = _TARGET_BLOCK_BYTES // (cols * itemsize)
    r = max(sub, (r // sub) * sub)
    # Keep >= 2 grid steps when possible so both v7x TensorCores get work.
    half = max(sub, ((rows // 2) // sub) * sub)
    return min(r, half, rows)


def merge_temporal_dim(x_seq: jax.Array) -> jax.Array:
    """Equivalent of MergeTemporalDim.forward: x_seq.flatten(0, 1).contiguous().

    x_seq: (T, B, *rest)  ->  (T*B, *rest)
    """
    T, B, *rest = x_seq.shape
    out_shape = (T * B, *rest)

    n = x_seq.size
    itemsize = jnp.dtype(x_seq.dtype).itemsize
    cols = _pick_cols(n)

    if cols is None:
        # No lane-dense (multiple-of-128) 2D factorization: the flatten is a pure
        # view reshape anyway, so return it directly instead of a masked-store copy.
        return x_seq.reshape(out_shape)

    rows = n // cols
    r_blk = _pick_row_block(rows, cols, itemsize)
    grid = (pl.cdiv(rows, r_blk),)

    # Glue: zero-cost view reshape to a lane-dense 2D layout.
    x2 = x_seq.reshape(rows, cols)

    out2 = pl.pallas_call(
        _copy_kernel,
        out_shape=jax.ShapeDtypeStruct((rows, cols), x_seq.dtype),
        grid_spec=pltpu.PrefetchScalarGridSpec(
            num_scalar_prefetch=0,
            grid=grid,
            in_specs=[pl.BlockSpec((r_blk, cols), lambda i: (i, 0))],
            out_specs=pl.BlockSpec((r_blk, cols), lambda i: (i, 0)),
        ),
        compiler_params=pltpu.CompilerParams(
            dimension_semantics=("parallel",),
            # Headroom beyond the scoped default so double-buffered 2 MiB blocks
            # never trip the VMEM limit on any generation.
            vmem_limit_bytes=32 * 1024 * 1024,
        ),
        cost_estimate=pl.CostEstimate(
            flops=0,
            transcendentals=0,
            bytes_accessed=2 * n * itemsize,
        ),
    )(x2)

    return out2.reshape(out_shape)


if __name__ == "__main__":
    key = jax.random.PRNGKey(0)

    # Primary case (matches the module's conv feature-map usage): (T, B, C, H, W).
    T, B, C, H, W = 2, 2, 4, 16, 16
    x_seq = jax.random.normal(key, (T, B, C, H, W), dtype=jnp.float32)
    y = jax.block_until_ready(merge_temporal_dim(x_seq))
    ref = x_seq.reshape(T * B, C, H, W)
    assert y.shape == (T * B, C, H, W), y.shape
    assert y.dtype == x_seq.dtype
    assert jnp.array_equal(y, ref)

    # Second case exercising a multi-step grid with a partial tail block.
    T2, B2, C2, H2, W2 = 2, 3, 8, 8, 8
    x2 = jax.random.normal(jax.random.PRNGKey(1), (T2, B2, C2, H2, W2), dtype=jnp.float32)
    y2 = jax.block_until_ready(merge_temporal_dim(x2))
    assert jnp.array_equal(y2, x2.reshape(T2 * B2, C2, H2, W2))

    # Third case: bf16 (16-row sublane packing) on a token-style shape (T, B, S, D).
    T3, B3, S3, D3 = 2, 2, 8, 128
    x3 = jax.random.normal(jax.random.PRNGKey(2), (T3, B3, S3, D3), dtype=jnp.bfloat16)
    y3 = jax.block_until_ready(merge_temporal_dim(x3))
    assert jnp.array_equal(y3, x3.reshape(T3 * B3, S3, D3))

    print("KERNEL_OK")
</pallas_src>

<mosaic_0001>
module attributes {stable_mosaic.version = 11 : i64} {
  func.func @_copy_kernel(%arg0: i32, %arg1: memref<8x512xf32, #tpu.memory_space<vmem>>, %arg2: memref<8x512xf32, #tpu.memory_space<vmem>>) attributes {dimension_semantics = [#tpu.dimension_semantics<parallel>], iteration_bounds = array<i64: 1>, scalar_prefetch = 0 : i64, scratch_operands = 0 : i64, tpu.core_type = #tpu.core_type<tc>, window_params = [{transform_indices = @transform_0, window_bounds = array<i64: 8, 512>}, {transform_indices = @transform_1, window_bounds = array<i64: 8, 512>}]} {
    %c0 = arith.constant 0 : index
    %c0_0 = arith.constant 0 : index
    %0 = vector.load %arg1[%c0, %c0_0] : memref<8x512xf32, #tpu.memory_space<vmem>>, vector<8x512xf32>
    %c0_1 = arith.constant 0 : index
    %c0_2 = arith.constant 0 : index
    %1 = vector.load %arg2[%c0_1, %c0_2] : memref<8x512xf32, #tpu.memory_space<vmem>>, vector<8x512xf32>
    tpu.vector_store %arg2[%c0_1, %c0_2], %0 {strides = array<i32>} : memref<8x512xf32, #tpu.memory_space<vmem>>, vector<8x512xf32>,
    return
  }
  func.func @transform_0(%arg0: i32) -> (i32, i32) {
    %c0_i32 = arith.constant 0 : i32
    %c0_i32_0 = arith.constant 0 : i32
    return %arg0, %c0_i32 : i32, i32
  }
  func.func @transform_1(%arg0: i32) -> (i32, i32) {
    %c0_i32 = arith.constant 0 : i32
    %c0_i32_0 = arith.constant 0 : i32
    return %arg0, %c0_i32 : i32, i32
  }
}

</mosaic_0001>

<bundles_post_ra>
// kernel: tpu_custom_call.1
= control target key start
LH: loop header
LB: loop body
LE: loop exit
PB: predicated region body
PF: predicated region fallthrough
CT: control target
= control target key end

     0   :  { %6 = vsyncpa [#allocation3], 0  ;;  %s130_s0 = inlined_call_operand.hbm [shape: f32[8,512], index: 0, kind: input, shape index: {}]   ;;  %s131_s1 = inlined_call_operand.hbm [shape: f32[8,512], index: 1, kind: output, shape index: {}]  }
   0x1   :  { %7 = vsyncpa [#allocation4], 0  ;;  %s94_s6 = smov [#allocation2]   ;;  %s46_s10 = scalar_lea.hbm %s130_s0, 512 }
   0x2   :  { %s14_s7 = sshll.u32 %s94_s6, 4  ;;  %p47_p0 = scmp.ne.s32.totalorder %s130_s0, %s46_s10  ;;  %s15_s7 = int_to_ptr.vmem [resolvable:$true] %s14_s7 }
   0x3   :  { %p50_p1 = scmp.lt.u32.totalorder %s46_s10, %s130_s0 }
   0x5   :  { %p52_p2 = pnand %p50_p1, %p47_p0 }
   0x7   :  { %55 = shalt.err (!%p52_p2)
}
   0x8   :  { %s56_s15 = scalar_lea.vmem %s15_s7, 512  ;;  %p61_p4 = scmp.lt.s32.totalorder %s15_s7, %s15_s7 }
   0x9   :  { %p57_p3 = scmp.ne.s32.totalorder %s15_s7, %s56_s15  ;;  %p62_p5 = scmp.lt.s32.totalorder %s56_s15, %s56_s15 }
   0xb   :  { %p63_p6 = por %p62_p5, %p61_p4 }
   0xd   :  { %p64_p7 = pnand %p63_p6, %p57_p3 }
   0xf   :  { %67 = shalt.err (!%p64_p7)
}
  0x10   :  { %17 = dma.hbm_to_vmem [thread:$0]  %s130_s0, 512, %s15_s7, [#allocation3]  }
  0x11   :  { %90 = dma.done.wait [#allocation3], 512  }
  0x12   :  { %91 = vsyncadd [#allocation3], 4294966784  ;;  %s95_s18 = smov [#allocation5]   ;;  %v21_v0 = vld [vmem:[#allocation2] sm:$0xff]  ;;  %v22_v1 = vld [vmem:[#allocation2 + $0x8] sm:$0xff] }
  0x13   :  { %s35_s19 = sshll.u32 %s95_s18, 4  ;;  %v23_v2 = vld [vmem:[#allocation2 + $0x10] sm:$0xff]  ;;  %25 = vst [vmem:[#allocation5] sm:$0xff] %v21_v0  ;;  %26 = vst [vmem:[#allocation5 + $0x8] sm:$0xff] %v22_v1  ;;  %v24_v3 = vld [vmem:[#allocation2 + $0x18] sm:$0xff]  ;;  %s36_s19 = int_to_ptr.vmem [resolvable:$true] %s35_s19 }
  0x14   :  { %27 = vst [vmem:[#allocation5 + $0x10] sm:$0xff] %v23_v2  ;;  %28 = vst [vmem:[#allocation5 + $0x18] sm:$0xff] %v24_v3  ;;  %s68_s20 = scalar_lea.vmem %s36_s19, 512  ;;  %p73_p9 = scmp.lt.s32.totalorder %s36_s19, %s36_s19 }
  0x15   :  { %p69_p8 = scmp.ne.s32.totalorder %s36_s19, %s68_s20  ;;  %p74_p10 = scmp.lt.s32.totalorder %s68_s20, %s68_s20 }
  0x17   :  { %p75_p11 = por %p74_p10, %p73_p9 }
  0x19   :  { %p76_p12 = pnand %p75_p11, %p69_p8 }
  0x1b   :  { %79 = shalt.err (!%p76_p12)
}
  0x1c   :  { %s80_s22 = scalar_lea.hbm %s131_s1, 512 }
  0x1d   :  { %p81_p13 = scmp.ne.s32.totalorder %s131_s1, %s80_s22  ;;  %p84_p0 = scmp.lt.u32.totalorder %s80_s22, %s131_s1 }
  0x1f   :  { %p86_p1 = pnand %p84_p0, %p81_p13 }
  0x21   :  { %89 = shalt.err (!%p86_p1)
}
  0x22   :  { %38 = dma.vmem_to_hbm [thread:$0]  %s36_s19, 512, %s131_s1, [#allocation4]  }
  0x23   :  { %92 = dma.done.wait [#allocation4], 512  }
  0x24   :  { %93 = vsyncadd [#allocation4], 4294966784 }
  0x25   :  { %42 = vsyncpa [#allocation3], 1 }
  0x26   :  { %43 = vsyncpa [#allocation4], 1 }

</bundles_post_ra>
